<compile_context>
chip_gen: v7x
topology: tpu7x:2x2x1
jax: 0.10.0
libtpu: 0.0.40
codegen_flags: <defaults>
</compile_context>

<pallas_src>
import functools

import jax
import jax.numpy as jnp
from jax.experimental import pallas as pl
from jax.experimental.pallas import tpu as pltpu


def _generic_basis_kernel(theta_ref, back_ref, fore_ref, *, backcast_size, forecast_size):
    theta = theta_ref[...]
    theta_size = theta.shape[-1]
    # backcast = theta[:, :backcast_size]   (static slice)
    back_ref[...] = theta[:, :backcast_size]
    # forecast = theta[:, -forecast_size:]  (static slice; start = theta_size - forecast_size)
    fore_ref[...] = theta[:, theta_size - forecast_size:]


def generic_basis(theta, backcast_size, forecast_size, *, block_rows=512):
    """Pallas implementation of GenericBasis.forward.

    theta: (B, theta_size) with theta_size >= max(backcast_size, forecast_size).
    Returns (backcast (B, backcast_size), forecast (B, forecast_size)).
    """
    b, theta_size = theta.shape
    assert theta_size >= backcast_size and theta_size >= forecast_size

    # Batch tile: full batch if it fits, otherwise a multiple of 8 rows
    # (satisfies the (8, 128) block tiling rule on the sublane axis).
    tb = min(block_rows, b)
    if tb < b and tb % 8 != 0:
        tb = max(8, (tb // 8) * 8)
    grid = (pl.cdiv(b, tb),)

    kernel = functools.partial(
        _generic_basis_kernel,
        backcast_size=backcast_size,
        forecast_size=forecast_size,
    )

    out_shapes = (
        jax.ShapeDtypeStruct((b, backcast_size), theta.dtype),
        jax.ShapeDtypeStruct((b, forecast_size), theta.dtype),
    )

    return pl.pallas_call(
        kernel,
        out_shape=out_shapes,
        grid=grid,
        in_specs=[pl.BlockSpec((tb, theta_size), lambda i: (i, 0))],
        out_specs=(
            pl.BlockSpec((tb, backcast_size), lambda i: (i, 0)),
            pl.BlockSpec((tb, forecast_size), lambda i: (i, 0)),
        ),
        compiler_params=pltpu.CompilerParams(
            dimension_semantics=("parallel",),
        ),
    )(theta)


if __name__ == "__main__":
    # GenericBasis has no learned parameters — only the two static sizes.
    backcast_size = 16
    forecast_size = 8
    theta_size = backcast_size + forecast_size
    batch = 16  # small, but enough rows to exercise a multi-step batch grid below

    key = jax.random.PRNGKey(0)
    theta = jax.random.normal(key, (batch, theta_size), dtype=jnp.float32)

    # Use an 8-row batch tile so the grid has >1 step (exercises pipelining path).
    backcast, forecast = generic_basis(
        theta, backcast_size, forecast_size, block_rows=8
    )
    jax.block_until_ready((backcast, forecast))

    # Reference check against plain JAX slicing (same semantics as the PyTorch module).
    ref_back = theta[:, :backcast_size]
    ref_fore = theta[:, -forecast_size:]
    assert backcast.shape == (batch, backcast_size)
    assert forecast.shape == (batch, forecast_size)
    assert jnp.array_equal(backcast, ref_back)
    assert jnp.array_equal(forecast, ref_fore)

    print("KERNEL_OK")
</pallas_src>

<mosaic_0001>
module attributes {stable_mosaic.version = 11 : i64} {
  func.func @_generic_basis_kernel(%arg0: i32, %arg1: memref<8x24xf32, #tpu.memory_space<vmem>>, %arg2: memref<8x16xf32, #tpu.memory_space<vmem>>, %arg3: memref<8x8xf32, #tpu.memory_space<vmem>>) attributes {dimension_semantics = [#tpu.dimension_semantics<parallel>], iteration_bounds = array<i64: 2>, scalar_prefetch = 0 : i64, scratch_operands = 0 : i64, tpu.core_type = #tpu.core_type<tc>, window_params = [{transform_indices = @transform_0, window_bounds = array<i64: 8, 24>}, {transform_indices = @transform_1, window_bounds = array<i64: 8, 16>}, {transform_indices = @transform_2, window_bounds = array<i64: 8, 8>}]} {
    %c0 = arith.constant 0 : index
    %c0_0 = arith.constant 0 : index
    %0 = vector.load %arg1[%c0, %c0_0] : memref<8x24xf32, #tpu.memory_space<vmem>>, vector<8x24xf32>
    %1 = vector.extract_strided_slice %0 {offsets = [0, 0], sizes = [8, 16], strides = [1, 1]} : vector<8x24xf32> to vector<8x16xf32>
    %c0_1 = arith.constant 0 : index
    %c0_2 = arith.constant 0 : index
    %2 = vector.load %arg2[%c0_1, %c0_2] : memref<8x16xf32, #tpu.memory_space<vmem>>, vector<8x16xf32>
    tpu.vector_store %arg2[%c0_1, %c0_2], %1 {strides = array<i32>} : memref<8x16xf32, #tpu.memory_space<vmem>>, vector<8x16xf32>,
    %3 = vector.extract_strided_slice %0 {offsets = [0, 16], sizes = [8, 8], strides = [1, 1]} : vector<8x24xf32> to vector<8x8xf32>
    %c0_3 = arith.constant 0 : index
    %c0_4 = arith.constant 0 : index
    %4 = vector.load %arg3[%c0_3, %c0_4] : memref<8x8xf32, #tpu.memory_space<vmem>>, vector<8x8xf32>
    tpu.vector_store %arg3[%c0_3, %c0_4], %3 {strides = array<i32>} : memref<8x8xf32, #tpu.memory_space<vmem>>, vector<8x8xf32>,
    return
  }
  func.func @transform_0(%arg0: i32) -> (i32, i32) {
    %c0_i32 = arith.constant 0 : i32
    %c0_i32_0 = arith.constant 0 : i32
    return %arg0, %c0_i32 : i32, i32
  }
  func.func @transform_1(%arg0: i32) -> (i32, i32) {
    %c0_i32 = arith.constant 0 : i32
    %c0_i32_0 = arith.constant 0 : i32
    return %arg0, %c0_i32 : i32, i32
  }
  func.func @transform_2(%arg0: i32) -> (i32, i32) {
    %c0_i32 = arith.constant 0 : i32
    %c0_i32_0 = arith.constant 0 : i32
    return %arg0, %c0_i32 : i32, i32
  }
}

</mosaic_0001>

<bundles_post_ra>
// kernel: tpu_custom_call.1
= control target key start
LH: loop header
LB: loop body
LE: loop exit
PB: predicated region body
PF: predicated region fallthrough
CT: control target
= control target key end

     0   :  { %8 = vsyncpa [#allocation3], 0  ;;  %s636_s0 = inlined_call_operand.hbm [shape: f32[16,24], index: 0, kind: input, shape index: {}]   ;;  %s637_s1 = inlined_call_operand.hbm [shape: f32[16,16], index: 1, kind: output, shape index: {0}]   ;;  %s638_s2 = inlined_call_operand.vmem [shape: f32[16,8], index: 2, kind: output, shape index: {1}]  }
   0x1   :  { %10 = vsyncpa [#allocation3 + $0x1], 0 }
   0x2   :  { %11 = vsyncpa [#allocation4], 0 }
   0x3   :  { %13 = vsyncpa [#allocation4 + $0x1], 0  ;;  %s470_s9 = smov 0   ;;  %s472_s10 = smov 0  }
   0x4   :  { %s474_s11 = smov 0   ;;  %s476_s12 = smov 0  }
   0x5 LB: > { %s491_s13 = sadd.s32 4294967295, %s450_s12   ;;  %s294_s14 = sadd.s32 4294967294, %s450_s12   ;;  %s450_s12 = sphi %s476_s12, %s653_s12   ;;  %s446_s11 = sphi %s474_s11, %s652_s11   ;;  %s442_s10 = sphi %s472_s10, %s651_s10   ;;  %s438_s9 = sphi %s470_s9, %s650_s9  }
   0x6   : > { %s495_s15 = sadd.s32 1, %s450_s12   ;;  %s26_s16 = sadd.s32 1, %s446_s11 }
   0x7   : > { %s23_s17 = ssub.s32 %s450_s12, %s495_s15  ;;  %p33_p0 = scmp.ne.s32.totalorder %s446_s11, %s442_s10 }
   0x8   : > { %p24_p1 = scmp.eq.s32.totalorder %s23_s17, 0  ;;  %p34_p2 = scmp.eq.s32.totalorder %s450_s12, 0 }
   0x9   : > { %p39_p3 = scmp.ne.s32.totalorder %s442_s10, %s438_s9  ;;  %p40_p4 = scmp.eq.s32.totalorder %s491_s13, 0 }
   0xa   : > { %s507_s18 = scalar_select %p24_p1, %s446_s11, %s26_s16  }
   0xb   : > { %p509_p5 = por %p34_p2, %p33_p0  ;;  %p513_p6 = por %p40_p4, %p39_p3 }
   0xc   : > { %p63_p7 = scmp.eq.s32.totalorder %s491_s13, 1  ;;  %p69_p8 = scmp.eq.s32.totalorder %s294_s14, 1 }
   0xd   : > { %p319_p10 = scmp.lt.s32.totalorder %s450_s12, 2  ;;  %s115_s23 = sand.u32 1, %s446_s11  }
   0xe   : > { %p520_p11 = por %p63_p7, %p33_p0  ;;  %p524_p12 = por %p69_p8, %p39_p3 }
   0xf   : > { %s298_s24 = sshll.u32 %s450_s12, 7  ;;  %s297_s25 = sshll.u32 %s115_s23, 3 }
  0x10   : > { %s642_s21 = scalar_select %p520_p11, 1, 0 }
  0x11   : > { %s643_s22 = scalar_select %p524_p12, 1, 0 }
  0x12   : > { %s533_s28 = scalar_lea.hbm %s636_s0, %s298_s24  ;;  %s119_s29 = scalar_lea.vmem [#allocation2], %s297_s25 }
  0x13   : > { %s126_s30 = sshll.u32 %s119_s29, 4  ;;  %p537_p13 = pnand %p319_p10, %p509_p5  ;;  %s541_s30 = int_to_ptr.vmem [resolvable:$true] %s126_s30 }
  0x14   : > { %s116_s4 = scalar_lea.sflag [#allocation3], %s115_s23  ;;  %s354_s5 = scalar_lea.hbm %s533_s28, 128 }
  0x15   : > { %p355_p2 = scmp.ne.s32.totalorder %s533_s28, %s354_s5  ;;  %p356_p3 = pneg %p537_p13 }
  0x16   : > { %s359_s8 = scalar_lea.hbm %s636_s0, 256  ;;  %p360_p5 = scmp.lt.u32.totalorder %s533_s28, %s636_s0 }
  0x17   : > { %p357_p4 = pnand %p356_p3, %p355_p2  ;;  %p361_p8 = scmp.lt.u32.totalorder %s359_s8, %s354_s5 }
  0x18   : > { %p363_p9 = scmp.lt.u32.totalorder %s354_s5, %s533_s28 }
  0x19   : > { %p358_p7 = pneg %p357_p4  ;;  %p362_p10 = por %p361_p8, %p360_p5 }
  0x1b   : > { %p364_p0 = por %p363_p9, %p362_p10 }
  0x1d   : > { %p365_p1 = pnand %p364_p0, %p358_p7 }
  0x1f   : > { %368 = shalt.err (!%p365_p1)
}
  0x20   : > { %s369_s17 = scalar_lea.vmem %s541_s30, 128  ;;  %s452_s19 = smov [#allocation2]  }
  0x21   : > { %p370_p2 = scmp.ne.s32.totalorder %s541_s30, %s369_s17  ;;  %s374_s23 = sshll.u32 %s452_s19, 4  ;;  %s375_s23 = int_to_ptr.vmem [resolvable:$false] %s374_s23 }
  0x22   : > { %s376_s24 = scalar_lea.vmem %s375_s23, 256  ;;  %p377_p11 = scmp.lt.s32.totalorder %s541_s30, %s375_s23 }
  0x23   : > { %p372_p4 = pnand %p370_p2, %p356_p3  ;;  %p378_p5 = scmp.lt.s32.totalorder %s376_s24, %s369_s17 }
  0x25   : > { %p373_p12 = pneg %p372_p4  ;;  %p379_p8 = por %p378_p5, %p377_p11 }
  0x27   : > { %p380_p9 = pnand %p379_p8, %p373_p12 }
  0x29   : > { %383 = shalt.err (!%p380_p9)
}
  0x2a   : > { %314 = dma.hbm_to_vmem [thread:$0]  (!%p537_p13), %s533_s28, 128, %s541_s30, %s116_s4  }
  0x2b   : > { %p645_p0 = scmp.lt.s32.totalorder %s450_s12, 3  ;;  %p646_p1 = scmp.ge.s32.totalorder %s450_s12, 1 }
  0x2d   : > { %p132_p3 = pnand %p646_p1, %p645_p0 }
  0x2e   : > { %s575_s25 = sand.u32 (!%p132_p3), 1, %s442_s10  }
  0x2f   : > { %135 = sbr.rel (%p132_p3) target bundleno = 174 (0xae), region = 24  ;;  %s300_s26 = sshll.u32 (!%p132_p3), %s575_s25, 3 }
  0x30   : > { %s138_s27 = scalar_lea.sflag (!%p132_p3), [#allocation3], %s575_s25  ;;  %s141_s29 = scalar_lea.vmem (!%p132_p3), [#allocation2], %s300_s26 }
  0x36   : > { %429 = dma.done.wait (%p513_p6), %s138_s27, 128  }
  0x37   : > { %431 = vsyncadd (%p513_p6), %s138_s27, 4294967168  ;;  %s304_s28 = sshll.u32 %s491_s13, 7  ;;  %s159_s30 = scalar_lea.vmem [#allocation5], %s300_s26  ;;  %vm171_vm0 = vcmask 130048   ;;  %v170_v0 = vld [vmem:[%s141_s29] sm:$0xff] }
  0x38   : > { %s197_s3 = sshll.u32 %s159_s30, 4  ;;  %s587_s6 = scalar_lea.hbm %s637_s1, %s304_s28  ;;  %172 = vst.msk [vmem:[%s159_s30] sm:$0xff] %vm171_vm0, %v170_v0  ;;  %s589_s3 = int_to_ptr.vmem [resolvable:$true] %s197_s3 }
  0x39   : > { %s453_s20 = smov 112   ;;  %s180_s7 = scalar_lea.sflag [#allocation4], %s575_s25 }
  0x3a   : > { %174 = vrot.lane.b32.xlu0 %v170_v0, %s453_s20  ;;  %s384_s8 = scalar_lea.vmem %s589_s3, 128  ;;  %p647_p11 = scmp.ne.s32.totalorder %s642_s21, 0 }
  0x3b   : > { %p385_p6 = scmp.ne.s32.totalorder %s589_s3, %s384_s8  ;;  %s454_s14 = smov [#allocation5]  }
  0x3c   : > { %s388_s16 = sshll.u32 %s454_s14, 4  ;;  %s389_s16 = int_to_ptr.vmem [resolvable:$false] %s388_s16 }
  0x3d   : > { %p386_p12 = pnand %p385_p6, %p647_p11  ;;  %s390_s17 = scalar_lea.vmem %s389_s16, 256 }
  0x3e   : > { %p391_p7 = scmp.lt.s32.totalorder %s589_s3, %s389_s16  ;;  %p392_p10 = scmp.lt.s32.totalorder %s390_s17, %s384_s8 }
  0x3f   : > { %p387_p13 = pneg %p386_p12 }
  0x40   : > { %p393_p2 = por %p392_p10, %p391_p7 }
  0x42   : > { %p394_p4 = pnand %p393_p2, %p387_p13 }
  0x44   : > { %397 = shalt.err (!%p394_p4)
}
  0x45   : > { %s398_s19 = scalar_lea.hbm %s587_s6, 128  ;;  %s402_s25 = scalar_lea.hbm %s637_s1, 256 }
  0x46   : > { %p399_p5 = scmp.ne.s32.totalorder %s587_s6, %s398_s19  ;;  %p403_p0 = scmp.lt.u32.totalorder %s587_s6, %s637_s1 }
  0x47   : > { %p404_p1 = scmp.lt.u32.totalorder %s402_s25, %s398_s19  ;;  %p406_p6 = scmp.lt.u32.totalorder %s398_s19, %s587_s6 }
  0x48   : > { %p400_p8 = pnand %p399_p5, %p647_p11 }
  0x49   : > { %p405_p3 = por %p404_p1, %p403_p0 }
  0x4a   : > { %p401_p9 = pneg %p400_p8 }
  0x4b   : > { %p407_p12 = por %p406_p6, %p405_p3 }
  0x4d   : > { %p408_p13 = pnand %p407_p12, %p401_p9 }
  0x4f   : > { %411 = shalt.err (!%p408_p13)
}
  0x50   : > { %309 = dma.vmem_to_hbm [thread:$0]  (%p647_p11), %s589_s3, 128, %s587_s6, %s180_s7   ;;  %vm177_vm1 = vcmask 64512  }
  0x51   : > { %p166_p7 = scmp.lt.s32.totalorder %s491_s13, 1 }
  0x53   : > { %s655_s13 = smov (!%p166_p7, %s491_s13), 1 }
  0x54   : > { %s302_s29 = sshll.u32 %s655_s13, 3 }
  0x55   : > { %s169_s4 = scalar_lea.vmem %s638_s2, %s302_s29 }
  0xac   : > { %v175_v1 = vpop.permute.xlu0 %174 }
  0xad   : > { %178 = vst.msk [vmem:[%s169_s4] sm:$0xff] %vm177_vm1, %v175_v1 }
  0xae PF: > { %s212_s21 = sand.u32 1, %s438_s9   ;;  %p648_p10 = scmp.ne.s32.totalorder %s643_s22, 0 }
  0xaf   : > { %p649_p2 = scmp.ge.s32.totalorder %s450_s12, 2  ;;  %s213_s5 = scalar_lea.sflag [#allocation4], %s212_s21 }
  0xb1   : > { %p316_p4 = pnand %p649_p2, %p648_p10 }
  0xb3   : > { %433 = dma.done.wait (!%p316_p4), %s213_s5, 128  }
  0xb4   : > { %435 = vsyncadd (!%p316_p4), %s213_s5, 4294967168  ;;  %p16_p11 = scmp.ge.s32.totalorder %s495_s15, 4   ;;  %s650_s9 = smov %s442_s10 }
  0xb5   : > { %s651_s10 = smov %s446_s11  ;;  %s652_s11 = smov %s507_s18 }
  0xb6   : > { %s653_s12 = smov %s495_s15  ;;  %18 = sbr.rel (!%p16_p11) target bundleno = 5 (0x5), region = 81 }
  0xbd   :  { %225 = vsyncpa [#allocation3], 1 }
  0xbe   :  { %227 = vsyncpa [#allocation3 + $0x1], 1 }
  0xbf   :  { %228 = vsyncpa [#allocation4], 1 }
  0xc0   :  { %230 = vsyncpa [#allocation4 + $0x1], 1 }

</bundles_post_ra>
